<compile_context>
chip_gen: v6e
topology: v6e:2x2x1
jax: 0.10.0
libtpu: 0.0.40
codegen_flags: <defaults>
</compile_context>

<pallas_src>
import functools

import numpy as np
import jax
import jax.numpy as jnp
from jax import lax
from jax.experimental import pallas as pl
from jax.experimental.pallas import tpu as pltpu

LANE = 128


# ------------------------------ helpers ------------------------------------
def _round_up(x, m):
    return ((x + m - 1) // m) * m


def _full_spec(shape):
    """BlockSpec covering the whole array (weights/biases, constant index map)."""
    nd = len(shape)
    return pl.BlockSpec(shape, lambda i, _nd=nd: (0,) * _nd)


# --------------------------- 1. fused front-end -----------------------------
def _frontend_kernel(ids_ref, emb_ref, w1T_ref, b1_ref, wihT_ref, bih_ref,
                     gxf_ref, gxb_ref):
    # ids_ref : (Rc, 1)    int32 token ids (time-major row order)
    # emb_ref : (Vpad, D)  bf16 embedding table (row 0 zero = padding_idx)
    # w1T_ref : (D, D)     bf16,  b1_ref: (1, D) f32
    # wihT_ref: (D, 8H)    bf16 [W_ih_f^T | W_ih_b^T]
    # bih_ref : (1, 8H)    f32  [b_ih_f+b_hh_f | b_ih_b+b_hh_b]
    ids = ids_ref[...]
    n = ids.shape[0]
    vpad = emb_ref.shape[0]
    # bf16 one-hot x bf16 table: exact (a single 0/1 term selects one bf16 row)
    # and avoids the f32 one-hot vreg spill + slow f32 MXU decomposition.
    # TODO(synk): switch to an in-kernel gather (jnp.take on the VMEM table)
    # once dynamic-gather lowering is verified on all target generations.
    onehot = (ids == lax.broadcasted_iota(jnp.int32, (n, vpad), 1)).astype(jnp.bfloat16)
    emb = jnp.dot(onehot, emb_ref[...], preferred_element_type=jnp.float32)      # (Rc, D)

    h1 = jnp.dot(emb.astype(jnp.bfloat16), w1T_ref[...],
                 preferred_element_type=jnp.float32) + b1_ref[...]
    h1 = jnp.maximum(h1, 0.0)                                                    # lin1 + ReLU

    g = jnp.dot(h1.astype(jnp.bfloat16), wihT_ref[...],
                preferred_element_type=jnp.float32) + bih_ref[...]               # (Rc, 8H)
    h4 = gxf_ref.shape[1]
    gxf_ref[...] = g[:, :h4].astype(gxf_ref.dtype)
    gxb_ref[...] = g[:, h4:].astype(gxb_ref.dtype)


def frontend(ids, kp, *, row_chunk=512):
    n = ids.shape[0]
    h4 = kp["wihT"].shape[1] // 2
    rc = _round_up(min(row_chunk, n), 8)
    grid = (pl.cdiv(n, rc),)                       # ragged tail handled by Pallas masking
    return pl.pallas_call(
        _frontend_kernel,
        out_shape=(jax.ShapeDtypeStruct((n, h4), jnp.bfloat16),
                   jax.ShapeDtypeStruct((n, h4), jnp.bfloat16)),
        grid=grid,
        in_specs=[pl.BlockSpec((rc, 1), lambda i: (i, 0)),
                  _full_spec(kp["emb"].shape),
                  _full_spec(kp["w1T"].shape),
                  _full_spec(kp["b1"].shape),
                  _full_spec(kp["wihT"].shape),
                  _full_spec(kp["bih"].shape)],
        out_specs=(pl.BlockSpec((rc, h4), lambda i: (i, 0)),
                   pl.BlockSpec((rc, h4), lambda i: (i, 0))),
        compiler_params=pltpu.CompilerParams(dimension_semantics=("parallel",)),
    )(ids, kp["emb"], kp["w1T"], kp["b1"], kp["wihT"], kp["bih"])


# ------------------- 2. fused bidirectional LSTM recurrence ------------------
def _bilstm_kernel(gxf_ref, gxb_ref, lens_ref, whh_ref, hsf_ref, hsb_ref,
                   h_sc, c_sc):
    # gxf_ref: (Tc, B, 4H) bf16 forward x-gates, chunk i (ascending global time)
    # gxb_ref: (Tc, B, 4H) bf16 backward x-gates, chunk nb-1-i (read reversed)
    # lens_ref: (B, 1) int32 sequence lengths
    # whh_ref: (2H, 8H) bf16 block-diagonal [W_hh_f^T | 0 ; 0 | W_hh_b^T]
    # hsf_ref / hsb_ref: (Tc, B, H) bf16 per-timestep hidden outputs (zero when pad)
    # h_sc, c_sc: (B, 2H) f32 carry -- lanes [:H] forward state, [H:] backward.
    tc, b, h4 = gxf_ref.shape
    h = h4 // 4
    i = pl.program_id(0)
    nb = pl.num_programs(0)

    @pl.when(i == 0)
    def _():
        h_sc[...] = jnp.zeros_like(h_sc)
        c_sc[...] = jnp.zeros_like(c_sc)

    lens = lens_ref[...]                      # (B, 1) int32

    def step(t):
        tb = tc - 1 - t
        t_f = i * tc + t                      # forward global timestep
        t_b = (nb - 1 - i) * tc + tb          # backward global timestep
        h_prev = h_sc[...]                    # (B, 2H) f32
        c_prev = c_sc[...]
        # ONE fused MXU push per step for both directions (block-diag W_hh),
        # bf16 operands / f32 accumulation, f32 carry (no drift).
        gh = jnp.dot(h_prev.astype(jnp.bfloat16), whh_ref[...],
                     preferred_element_type=jnp.float32)          # (B, 8H)
        g_f = gxf_ref[t].astype(jnp.float32) + gh[:, :h4]
        g_b = gxb_ref[tb].astype(jnp.float32) + gh[:, h4:]

        def gates(g):
            # PyTorch gate order: i, f, g, o.  Elementwise math stays f32.
            # TODO(synk): pad each gate's lane block to 128 in prepare_params
            # when H < 128 so these slices are lane-tile aligned.
            i_g = jax.nn.sigmoid(g[:, 0 * h:1 * h])
            f_g = jax.nn.sigmoid(g[:, 1 * h:2 * h])
            g_g = jnp.tanh(g[:, 2 * h:3 * h])
            o_g = jax.nn.sigmoid(g[:, 3 * h:4 * h])
            return i_g, f_g, g_g, o_g

        i_f, f_f, gg_f, o_f = gates(g_f)
        i_b, f_b, gg_b, o_b = gates(g_b)
        c_f = f_f * c_prev[:, :h] + i_f * gg_f
        c_b = f_b * c_prev[:, h:] + i_b * gg_b
        h_f = o_f * jnp.tanh(c_f)
        h_b = o_b * jnp.tanh(c_b)

        keep_f = t_f < lens                   # (B, 1) bool, computed in-kernel
        keep_b = t_b < lens
        # masked update reproduces pack_padded_sequence semantics exactly;
        # it also gates any garbage read from a ragged (OOB) tail block.
        h_sc[:, :h] = jnp.where(keep_f, h_f, h_prev[:, :h])
        h_sc[:, h:] = jnp.where(keep_b, h_b, h_prev[:, h:])
        c_sc[:, :h] = jnp.where(keep_f, c_f, c_prev[:, :h])
        c_sc[:, h:] = jnp.where(keep_b, c_b, c_prev[:, h:])
        # padded positions written as zeros (pad_packed_sequence behavior)
        hsf_ref[t] = jnp.where(keep_f, h_f, 0.0).astype(hsf_ref.dtype)
        hsb_ref[tb] = jnp.where(keep_b, h_b, 0.0).astype(hsb_ref.dtype)

    if tc <= 16:
        for t in range(tc):                   # full unroll (static, small chunk)
            step(t)
    else:
        def body(t, carry):
            step(t)
            return carry
        lax.fori_loop(0, tc, body, 0, unroll=4)


def _derive_time_chunk(t_len, b, h, budget_bytes):
    # double-buffered bf16 gx (2 dirs) + hs (2 dirs) block bytes per timestep
    per_t = 2 * ((b * 4 * h * 2) * 2 + (b * h * 2) * 2)
    tc = budget_bytes // max(per_t, 1)
    return int(max(1, min(tc, 128, t_len)))


def _bilstm_vmem_limit(tc, b, h):
    gx_blk = tc * b * 4 * h * 2
    hs_blk = tc * b * h * 2
    whh = (2 * h) * (8 * h) * 2
    scratch = 2 * (b * 2 * h) * 4
    need = 2 * 2 * (gx_blk + hs_blk) + 2 * (whh + b * 4) + scratch
    return int(min(max(2 * need, 16 << 20), 100 << 20))


def bilstm(gxf, gxb, lens, whh_bd, *, time_chunk=None, vmem_budget_bytes=24 << 20):
    t_len, b, h4 = gxf.shape
    h = h4 // 4
    tc = time_chunk if time_chunk is not None else _derive_time_chunk(
        t_len, b, h, vmem_budget_bytes)
    tc = int(min(tc, t_len))
    nb = pl.cdiv(t_len, tc)
    fwd = lambda i: (i, 0, 0)
    bwd = lambda i: (nb - 1 - i, 0, 0)
    # TODO(synk): on v7x, split fwd/bwd across the two TensorCores (leading
    # size-2 core-parallel grid axis / pl.core_map) for ~2x on the recurrence.
    # TODO(synk): follow-up — fold the frontend x-gate projection into this
    # kernel with pltpu.emit_pipeline so gx never round-trips HBM.
    return pl.pallas_call(
        _bilstm_kernel,
        out_shape=(jax.ShapeDtypeStruct((t_len, b, h), jnp.bfloat16),
                   jax.ShapeDtypeStruct((t_len, b, h), jnp.bfloat16)),
        grid=(nb,),
        in_specs=[pl.BlockSpec((tc, b, h4), fwd),
                  pl.BlockSpec((tc, b, h4), bwd),
                  _full_spec(lens.shape),
                  _full_spec(whh_bd.shape)],
        out_specs=(pl.BlockSpec((tc, b, h), fwd),
                   pl.BlockSpec((tc, b, h), bwd)),
        scratch_shapes=[pltpu.VMEM((b, 2 * h), jnp.float32),   # h carry
                        pltpu.VMEM((b, 2 * h), jnp.float32)],  # c carry
        compiler_params=pltpu.CompilerParams(
            dimension_semantics=("arbitrary",),
            vmem_limit_bytes=_bilstm_vmem_limit(tc, b, h)),
    )(gxf, gxb, lens, whh_bd)


# ---------------------- 3. fused decoder + log_softmax ----------------------
def _decoder_kernel(hf_ref, hb_ref, wdT_ref, bd_ref, o_ref, *, valid_cols):
    # single K=2H matmul: lane-concat the two direction streams
    hcat = jnp.concatenate([hf_ref[...], hb_ref[...]], axis=-1)        # (Rc, 2H) bf16
    y = jnp.dot(hcat, wdT_ref[...], preferred_element_type=jnp.float32) + bd_ref[...]
    n, apad = y.shape
    col = lax.broadcasted_iota(jnp.int32, (n, apad), 1)
    y = jnp.where(col < valid_cols, y, jnp.float32(-1e30))             # mask lane padding
    m = jnp.max(y, axis=-1, keepdims=True)
    s = jnp.sum(jnp.exp(y - m), axis=-1, keepdims=True)
    o_ref[...] = y - m - jnp.log(s)


def decoder_log_softmax(hf, hb, kp, *, row_chunk=512):
    n, h = hf.shape
    apad = kp["bd"].shape[1]
    rc = _round_up(min(row_chunk, n), 8)
    grid = (pl.cdiv(n, rc),)
    return pl.pallas_call(
        functools.partial(_decoder_kernel, valid_cols=kp["alphabet_size"]),
        out_shape=jax.ShapeDtypeStruct((n, apad), jnp.float32),
        grid=grid,
        in_specs=[pl.BlockSpec((rc, h), lambda i: (i, 0)),
                  pl.BlockSpec((rc, h), lambda i: (i, 0)),
                  _full_spec(kp["wdT"].shape),
                  _full_spec(kp["bd"].shape)],
        out_specs=pl.BlockSpec((rc, apad), lambda i: (i, 0)),
        compiler_params=pltpu.CompilerParams(dimension_semantics=("parallel",)),
    )(hf, hb, kp["wdT"], kp["bd"])


# ------------------------------ parameters ----------------------------------
def init_params(key, embedding_dim, hidden_dim, vocab_size=257, alphabet_size=28):
    h = hidden_dim // 2
    ks = jax.random.split(key, 16)

    def u(k, shape, scale):
        return jax.random.uniform(k, shape, jnp.float32, -scale, scale)

    emb = jax.random.normal(ks[0], (vocab_size, embedding_dim), jnp.float32)
    emb = emb.at[0].set(0.0)                       # padding_idx = 0
    kl = 1.0 / float(np.sqrt(embedding_dim))
    kh = 1.0 / float(np.sqrt(h))
    kd = 1.0 / float(np.sqrt(hidden_dim))
    params = dict(
        emb=emb,
        w1=u(ks[1], (embedding_dim, embedding_dim), kl),
        b1=u(ks[2], (embedding_dim,), kl),
        wd=u(ks[13], (alphabet_size, hidden_dim), kd),
        bd=u(ks[14], (alphabet_size,), kd),
    )
    for d, off in (("f", 3), ("b", 8)):
        params[f"w_ih_{d}"] = u(ks[off + 0], (4 * h, embedding_dim), kh)
        params[f"w_hh_{d}"] = u(ks[off + 1], (4 * h, h), kh)
        params[f"b_ih_{d}"] = u(ks[off + 2], (4 * h,), kh)
        params[f"b_hh_{d}"] = u(ks[off + 3], (4 * h,), kh)
    return params


def prepare_params(p, vocab_size, alphabet_size):
    """One-time packing into kernel layout: transposed, padded, bf16 MXU operands."""
    d = p["w1"].shape[0]
    h = p["w_hh_f"].shape[1]
    hidden = p["wd"].shape[1]                       # 2H
    vpad = _round_up(vocab_size, LANE)
    apad = _round_up(alphabet_size, LANE)

    emb = jnp.zeros((vpad, d), jnp.float32).at[:vocab_size].set(p["emb"])
    wihT = jnp.concatenate([p["w_ih_f"].T, p["w_ih_b"].T], axis=1)   # (D, 8H)
    bih = jnp.concatenate([p["b_ih_f"] + p["b_hh_f"],
                           p["b_ih_b"] + p["b_hh_b"]]).reshape(1, 8 * h)
    # block-diagonal recurrent weight: (2H, 8H), one MXU push per timestep
    whh_bd = jnp.zeros((2 * h, 8 * h), jnp.float32)
    whh_bd = whh_bd.at[:h, :4 * h].set(p["w_hh_f"].T)
    whh_bd = whh_bd.at[h:, 4 * h:].set(p["w_hh_b"].T)
    wdT = jnp.zeros((hidden, apad), jnp.float32).at[:, :alphabet_size].set(p["wd"].T)
    bd = jnp.zeros((1, apad), jnp.float32).at[0, :alphabet_size].set(p["bd"])
    return dict(
        emb=emb.astype(jnp.bfloat16),
        w1T=p["w1"].T.astype(jnp.bfloat16),
        b1=p["b1"].reshape(1, d),
        wihT=wihT.astype(jnp.bfloat16),
        bih=bih,
        whh_bd=whh_bd.astype(jnp.bfloat16),
        wdT=wdT.astype(jnp.bfloat16),
        bd=bd,
        alphabet_size=alphabet_size,
    )


# ------------------------------ forward pass --------------------------------
def lstm_asr_discrete_forward(kp, x, x_lens, *, time_chunk=None, row_chunk=512):
    b, t = x.shape
    h = kp["whh_bd"].shape[0] // 2
    apad = kp["bd"].shape[1]
    a = kp["alphabet_size"]

    # time-major token ids; the only input-side layout shuffle (tiny int32)
    ids_tm = x.astype(jnp.int32).T.reshape(t * b, 1)

    gxf, gxb = frontend(ids_tm, kp, row_chunk=row_chunk)   # (T*B, 4H) bf16, time-major
    gxf = gxf.reshape(t, b, 4 * h)
    gxb = gxb.reshape(t, b, 4 * h)

    lens = jnp.asarray(np.asarray(x_lens), jnp.int32).reshape(b, 1)

    hs_f, hs_b = bilstm(gxf, gxb, lens, kp["whh_bd"],
                        time_chunk=time_chunk)             # (T, B, H) bf16 each

    # pad_packed_sequence returns length max(x_lens).
    # TODO(synk): t_out is a host constant -> distinct max lengths retrace; bucket if needed.
    t_out = int(np.max(np.asarray(x_lens)))
    hf = hs_f[:t_out].reshape(t_out * b, h)
    hb = hs_b[:t_out].reshape(t_out * b, h)

    logp = decoder_log_softmax(hf, hb, kp, row_chunk=row_chunk)   # (T_out*B, Apad)
    return logp.reshape(t_out, b, apad).transpose(1, 0, 2)[:, :, :a]


# --------------------------------- main -------------------------------------
if __name__ == "__main__":
    key = jax.random.PRNGKey(0)
    embedding_dim, hidden_dim = 64, 64
    vocab_size, alphabet_size = 257, 28
    B, T = 4, 10

    pkey, xkey = jax.random.split(key)
    params = init_params(pkey, embedding_dim, hidden_dim, vocab_size, alphabet_size)
    kparams = prepare_params(params, vocab_size, alphabet_size)

    x_lens = np.array([10, 7, 5, 3], dtype=np.int32)
    x = jax.random.randint(xkey, (B, T), 1, vocab_size, dtype=jnp.int32)
    # zero out padding positions (token id 0 == padding_idx)
    x = jnp.where(jnp.arange(T)[None, :] < jnp.asarray(x_lens)[:, None], x, 0)

    # time_chunk=4 -> 3 time chunks incl. a ragged tail; row_chunk=32 -> ragged
    # row tiles in frontend/decoder.  Exercises the carried h/c state across
    # grid steps and the cdiv/masked-tail paths.
    out = lstm_asr_discrete_forward(kparams, x, x_lens, time_chunk=4, row_chunk=32)
    out = jax.block_until_ready(out)

    assert out.shape == (B, int(x_lens.max()), alphabet_size)
    assert bool(jnp.all(jnp.isfinite(out)))
    print("KERNEL_OK")
</pallas_src>

<mosaic_0001>
module attributes {stable_mosaic.version = 11 : i64} {
  func.func @_frontend_kernel(%arg0: i32, %arg1: memref<32x1xi32, #tpu.memory_space<vmem>>, %arg2: memref<384x64xbf16, #tpu.memory_space<vmem>>, %arg3: memref<64x64xbf16, #tpu.memory_space<vmem>>, %arg4: memref<1x64xf32, #tpu.memory_space<vmem>>, %arg5: memref<64x256xbf16, #tpu.memory_space<vmem>>, %arg6: memref<1x256xf32, #tpu.memory_space<vmem>>, %arg7: memref<32x128xbf16, #tpu.memory_space<vmem>>, %arg8: memref<32x128xbf16, #tpu.memory_space<vmem>>) attributes {dimension_semantics = [#tpu.dimension_semantics<parallel>], iteration_bounds = array<i64: 2>, scalar_prefetch = 0 : i64, scratch_operands = 0 : i64, tpu.core_type = #tpu.core_type<tc>, window_params = [{transform_indices = @transform_0, window_bounds = array<i64: 32, 1>}, {pipeline_mode = #tpu.pipeline_mode<synchronous>, transform_indices = @transform_1, window_bounds = array<i64: 384, 64>}, {pipeline_mode = #tpu.pipeline_mode<synchronous>, transform_indices = @transform_2, window_bounds = array<i64: 64, 64>}, {pipeline_mode = #tpu.pipeline_mode<synchronous>, transform_indices = @transform_3, window_bounds = array<i64: 1, 64>}, {pipeline_mode = #tpu.pipeline_mode<synchronous>, transform_indices = @transform_4, window_bounds = array<i64: 64, 256>}, {pipeline_mode = #tpu.pipeline_mode<synchronous>, transform_indices = @transform_5, window_bounds = array<i64: 1, 256>}, {transform_indices = @transform_6, window_bounds = array<i64: 32, 128>}, {transform_indices = @transform_7, window_bounds = array<i64: 32, 128>}]} {
    %c0 = arith.constant 0 : index
    %c0_0 = arith.constant 0 : index
    %0 = vector.load %arg1[%c0, %c0_0] : memref<32x1xi32, #tpu.memory_space<vmem>>, vector<32x1xi32>
    %1 = tpu.iota {dimensions = array<i32: 1>} : vector<32x384xi32>
    %2 = vector.broadcast %0 : vector<32x1xi32> to vector<32x384xi32>
    %3 = arith.cmpi eq, %2, %1 : vector<32x384xi32>
    %4 = arith.extui %3 : vector<32x384xi1> to vector<32x384xi32>
    %5 = arith.sitofp %4 : vector<32x384xi32> to vector<32x384xf32>
    %6 = arith.truncf %5 : vector<32x384xf32> to vector<32x384xbf16>
    %c0_1 = arith.constant 0 : index
    %c0_2 = arith.constant 0 : index
    %7 = vector.load %arg2[%c0_1, %c0_2] : memref<384x64xbf16, #tpu.memory_space<vmem>>, vector<384x64xbf16>
    %cst = arith.constant dense<0.000000e+00> : vector<32x64xf32>
    %8 = tpu.matmul %6, %7, %cst {dimension_numbers = #tpu.dot_dimension_numbers<[1], [0], [0], [1], [0, 0, 1, 1], [], []>} : vector<32x384xbf16>, vector<384x64xbf16>, vector<32x64xf32> -> vector<32x64xf32>
    %9 = arith.truncf %8 : vector<32x64xf32> to vector<32x64xbf16>
    %c0_3 = arith.constant 0 : index
    %c0_4 = arith.constant 0 : index
    %10 = vector.load %arg3[%c0_3, %c0_4] : memref<64x64xbf16, #tpu.memory_space<vmem>>, vector<64x64xbf16>
    %cst_5 = arith.constant dense<0.000000e+00> : vector<32x64xf32>
    %11 = tpu.matmul %9, %10, %cst_5 {dimension_numbers = #tpu.dot_dimension_numbers<[1], [0], [0], [1], [0, 0, 1, 1], [], []>} : vector<32x64xbf16>, vector<64x64xbf16>, vector<32x64xf32> -> vector<32x64xf32>
    %c0_6 = arith.constant 0 : index
    %c0_7 = arith.constant 0 : index
    %12 = vector.load %arg4[%c0_6, %c0_7] : memref<1x64xf32, #tpu.memory_space<vmem>>, vector<1x64xf32>
    %13 = vector.broadcast %12 : vector<1x64xf32> to vector<32x64xf32>
    %14 = arith.addf %11, %13 : vector<32x64xf32>
    %cst_8 = arith.constant 0.000000e+00 : f32
    %15 = vector.broadcast %cst_8 : f32 to vector<32x64xf32>
    %16 = arith.maximumf %14, %15 : vector<32x64xf32>
    %17 = arith.truncf %16 : vector<32x64xf32> to vector<32x64xbf16>
    %c0_9 = arith.constant 0 : index
    %c0_10 = arith.constant 0 : index
    %18 = vector.load %arg5[%c0_9, %c0_10] : memref<64x256xbf16, #tpu.memory_space<vmem>>, vector<64x256xbf16>
    %cst_11 = arith.constant dense<0.000000e+00> : vector<32x256xf32>
    %19 = tpu.matmul %17, %18, %cst_11 {dimension_numbers = #tpu.dot_dimension_numbers<[1], [0], [0], [1], [0, 0, 1, 1], [], []>} : vector<32x64xbf16>, vector<64x256xbf16>, vector<32x256xf32> -> vector<32x256xf32>
    %c0_12 = arith.constant 0 : index
    %c0_13 = arith.constant 0 : index
    %20 = vector.load %arg6[%c0_12, %c0_13] : memref<1x256xf32, #tpu.memory_space<vmem>>, vector<1x256xf32>
    %21 = vector.broadcast %20 : vector<1x256xf32> to vector<32x256xf32>
    %22 = arith.addf %19, %21 : vector<32x256xf32>
    %23 = vector.extract_strided_slice %22 {offsets = [0, 0], sizes = [32, 128], strides = [1, 1]} : vector<32x256xf32> to vector<32x128xf32>
    %24 = arith.truncf %23 : vector<32x128xf32> to vector<32x128xbf16>
    %c0_14 = arith.constant 0 : index
    %c0_15 = arith.constant 0 : index
    %25 = vector.load %arg7[%c0_14, %c0_15] : memref<32x128xbf16, #tpu.memory_space<vmem>>, vector<32x128xbf16>
    tpu.vector_store %arg7[%c0_14, %c0_15], %24 {strides = array<i32>} : memref<32x128xbf16, #tpu.memory_space<vmem>>, vector<32x128xbf16>,
    %26 = vector.extract_strided_slice %22 {offsets = [0, 128], sizes = [32, 128], strides = [1, 1]} : vector<32x256xf32> to vector<32x128xf32>
    %27 = arith.truncf %26 : vector<32x128xf32> to vector<32x128xbf16>
    %c0_16 = arith.constant 0 : index
    %c0_17 = arith.constant 0 : index
    %28 = vector.load %arg8[%c0_16, %c0_17] : memref<32x128xbf16, #tpu.memory_space<vmem>>, vector<32x128xbf16>
    tpu.vector_store %arg8[%c0_16, %c0_17], %27 {strides = array<i32>} : memref<32x128xbf16, #tpu.memory_space<vmem>>, vector<32x128xbf16>,
    return
  }
  func.func @transform_0(%arg0: i32) -> (i32, i32) {
    %c0_i32 = arith.constant 0 : i32
    %c0_i32_0 = arith.constant 0 : i32
    return %arg0, %c0_i32 : i32, i32
  }
  func.func @transform_1(%arg0: i32) -> (i32, i32) {
    %c0_i32 = arith.constant 0 : i32
    %c0_i32_0 = arith.constant 0 : i32
    %c0_i32_1 = arith.constant 0 : i32
    return %c0_i32, %c0_i32_0 : i32, i32
  }
  func.func @transform_2(%arg0: i32) -> (i32, i32) {
    %c0_i32 = arith.constant 0 : i32
    %c0_i32_0 = arith.constant 0 : i32
    %c0_i32_1 = arith.constant 0 : i32
    return %c0_i32, %c0_i32_0 : i32, i32
  }
  func.func @transform_3(%arg0: i32) -> (i32, i32) {
    %c0_i32 = arith.constant 0 : i32
    %c0_i32_0 = arith.constant 0 : i32
    %c0_i32_1 = arith.constant 0 : i32
    return %c0_i32, %c0_i32_0 : i32, i32
  }
  func.func @transform_4(%arg0: i32) -> (i32, i32) {
    %c0_i32 = arith.constant 0 : i32
    %c0_i32_0 = arith.constant 0 : i32
    %c0_i32_1 = arith.constant 0 : i32
    return %c0_i32, %c0_i32_0 : i32, i32
  }
  func.func @transform_5(%arg0: i32) -> (i32, i32) {
    %c0_i32 = arith.constant 0 : i32
    %c0_i32_0 = arith.constant 0 : i32
    %c0_i32_1 = arith.constant 0 : i32
    return %c0_i32, %c0_i32_0 : i32, i32
  }
  func.func @transform_6(%arg0: i32) -> (i32, i32) {
    %c0_i32 = arith.constant 0 : i32
    %c0_i32_0 = arith.constant 0 : i32
    return %arg0, %c0_i32 : i32, i32
  }
  func.func @transform_7(%arg0: i32) -> (i32, i32) {
    %c0_i32 = arith.constant 0 : i32
    %c0_i32_0 = arith.constant 0 : i32
    return %arg0, %c0_i32 : i32, i32
  }
}

</mosaic_0001>

<bundles_post_ra>
// kernel: tpu_custom_call.1
= control target key start
LH: loop header
LB: loop body
LE: loop exit
PB: predicated region body
PF: predicated region fallthrough
CT: control target
= control target key end

     0   :  { %s1808_s0 = inlined_call_operand.vmem [shape: s32[40,1], index: 0, kind: input, shape index: {}]   ;;  %s1809_s1 = inlined_call_operand.vmem [shape: bf16[384,64], index: 1, kind: input, shape index: {}]   ;;  %s1810_s2 = inlined_call_operand.vmem [shape: bf16[64,64], index: 2, kind: input, shape index: {}]   ;;  %s1811_s3 = inlined_call_operand.vmem [shape: f32[1,64], index: 3, kind: input, shape index: {}]   ;;  %s1812_s4 = inlined_call_operand.vmem [shape: bf16[64,256], index: 4, kind: input, shape index: {}]   ;;  %s1813_s5 = inlined_call_operand.vmem [shape: f32[1,256], index: 5, kind: input, shape index: {}]   ;;  %s1814_s6 = inlined_call_operand.hbm [shape: bf16[40,128], index: 6, kind: output, shape index: {0}]   ;;  %s1815_s7 = inlined_call_operand.hbm [shape: bf16[40,128], index: 7, kind: output, shape index: {1}]  }
   0x1   :  { %1817 = sst [smem:[#allocation8_spill]] %s1808_s0 }
   0x2   :  { %13 = vsyncpa [#allocation3], 0 }
   0x3   :  { %15 = vsyncpa [#allocation3 + $0x1], 0 }
   0x4   :  { %16 = vsyncpa [#allocation5], 0 }
   0x5   :  { %18 = vsyncpa [#allocation5 + $0x1], 0  ;;  %s1511_s24 = smov 0   ;;  %s1513_s25 = smov 0  }
   0x6   :  { %s1515_s26 = smov 0   ;;  %s1517_s27 = smov 0  }
   0x7 LB: > { %s1532_s28 = sadd.s32 4294967295, %s1461_s27   ;;  %s1076_s29 = sadd.s32 4294967294, %s1461_s27   ;;  %s1461_s27 = sphi %s1517_s27, %s1827_s27   ;;  %s1457_s26 = sphi %s1515_s26, %s1826_s26   ;;  %s1453_s25 = sphi %s1513_s25, %s1825_s25   ;;  %s1449_s24 = sphi %s1511_s24, %s1824_s24  }
   0x8   : > { %s1536_s30 = sadd.s32 1, %s1461_s27   ;;  %s162_s8 = sadd.s32 1, %s1457_s26 }
   0x9   : > { %s159_s9 = ssub.s32 %s1461_s27, %s1536_s30  ;;  %p172_p0 = scmp.ne.s32.totalorder %s1457_s26, %s1453_s25 }
   0xa   : > { %p160_p1 = scmp.eq.s32.totalorder %s159_s9, 0  ;;  %p173_p2 = scmp.eq.s32.totalorder %s1532_s28, 1 }
   0xb   : > { %p178_p3 = scmp.ne.s32.totalorder %s1453_s25, %s1449_s24  ;;  %p179_p4 = scmp.eq.s32.totalorder %s1076_s29, 1 }
   0xc   : > { %s1547_s10 = scalar_select %p160_p1, %s1457_s26, %s162_s8  }
   0xd   : > { %p1549_p5 = por %p173_p2, %p172_p0  ;;  %p1553_p6 = por %p179_p4, %p178_p3 }
   0xe   : > { %p1079_p7 = scmp.ge.s32.totalorder %s1461_s27, 1  ;;  %p255_p8 = scmp.lt.s32.totalorder %s1461_s27, 3 }
  0x10   : > { %p256_p9 = pnand %p1079_p7, %p255_p8 }
  0x11   : > { %s1560_s13 = sshll.u32 (!%p256_p9), %s1532_s28, 2  ;;  %s1820_s0 = sld [smem:[#allocation8_spill]] (!%p256_p9) }
  0x12   : > { %259 = sbr.rel (%p256_p9) target bundleno = 853 (0x355), region = 44  ;;  %p301_p10 = scmp.lt.s32.totalorder (!%p256_p9), %s1560_s13, 4 }
  0x17   : > { %v1463_v0 = vmov 0   ;;  %v1331_v1 = vld [vmem:[%s1809_s1 + $0x78] sm:$0xff]   ;;  %s302_s18 = scalar_select %p301_p10, %s1560_s13, 4  ;;  %v1334_v4 = vld [vmem:[%s1809_s1 + $0x70] sm:$0xff]   ;;  %v1337_v11 = vld [vmem:[%s1809_s1 + $0x68] sm:$0xff]   ;;  %v325_v29 = vlaneseq }
  0x18   : > { %1329 = vset.pattern.permute.xlu0 %v1463_v0  ;;  %1330 = vset.pattern.permute.xlu1 %v1463_v0  ;;  %v1332_v2 = vld [vmem:[%s1809_s1 + $0xb8] sm:$0xff]   ;;  %v1335_v5 = vld [vmem:[%s1809_s1 + $0xb0] sm:$0xff]   ;;  %v1338_v12 = vld [vmem:[%s1809_s1 + $0xa8] sm:$0xff]   ;;  %v1464_v37 = vmov 1.0|1.0  }
  0x19   : > { %1205 = vmatprep.subr.bf16.mxu0 %v1331_v1  ;;  %v1333_v3 = vld [vmem:[%s1809_s1 + $0x38] sm:$0xff]   ;;  %1249 = vmatprep.subr.bf16.mxu1 %v1332_v2  ;;  %s1083_s23 = sshll.u32 %s302_s18, 3  ;;  %v1336_v6 = vld [vmem:[%s1809_s1 + $0x30] sm:$0xff]   ;;  %v1339_v13 = vld [vmem:[%s1809_s1 + $0x28] sm:$0xff]   ;;  %v326_v30 = vand.u32 127, %v325_v29 }
  0x1a   : > { %1206 = vmatpush3.bf16.msra.mxu0 %v1333_v3  ;;  %1250 = vmatpush3.bf16.msra.mxu1 %v1332_v2  ;;  %s304_s15 = scalar_lea.vmem %s1820_s0, %s1083_s23  ;;  %v1340_v14 = vld [vmem:[%s1809_s1 + $0x60] sm:$0xff]   ;;  %v1343_v17 = vld [vmem:[%s1809_s1 + $0x58] sm:$0xff]   ;;  %v1346_v20 = vld [vmem:[%s1809_s1 + $0x50] sm:$0xff]   ;;  %s949_s23 = ssub.s32 (%p1549_p5), 5, %s1560_s13 }
  0x1b   : > { %1207 = vmatprep.subr.bf16.mxu0 %v1334_v4  ;;  %v321_v7 = vld [vmem:[%s304_s15] sm:$0xff]  ;;  %v323_v8 = vld [vmem:[%s304_s15 + $0x10] sm:$0xff]  ;;  %v322_v9 = vld [vmem:[%s304_s15 + $0x8] sm:$0xff]  ;;  %1251 = vmatprep.subr.bf16.mxu1 %v1335_v5  ;;  %v327_v33 = vadd.s32 128, %v326_v30  ;;  %v328_v34 = vadd.s32 256, %v326_v30  ;;  %p950_p11 = scmp.lt.s32.totalorder (%p1549_p5), %s949_s23, 4 }
  0x1c   : > { %330 = vperm.xlu0 %1329, %v321_v7   ;;  %336 = vperm.xlu1 %1330, %v323_v8   ;;  %v324_v10 = vld [vmem:[%s304_s15 + $0x18] sm:$0xff]  ;;  %v1341_v15 = vld [vmem:[%s1809_s1 + $0xa0] sm:$0xff]   ;;  %v1347_v21 = vld [vmem:[%s1809_s1 + $0x90] sm:$0xff]   ;;  %s1688_s15 = sand.u32 1, %s1453_s25  }
  0x1d   : > { %v1342_v16 = vld [vmem:[%s1809_s1 + $0x20] sm:$0xff]   ;;  %v1344_v18 = vld [vmem:[%s1809_s1 + $0x98] sm:$0xff]   ;;  %v1348_v22 = vld [vmem:[%s1809_s1 + $0x10] sm:$0xff]   ;;  %s1080_s18 = sshll.u32 %s1688_s15, 4  ;;  %s1816_s21 = scalar_lea.sflag [#allocation3], %s1688_s15 }
  0x1e   : > { %1208 = vmatpush3.bf16.msra.mxu0 %v1336_v6  ;;  %1252 = vmatpush3.bf16.msra.mxu1 %v1335_v5  ;;  %v1345_v19 = vld [vmem:[%s1809_s1 + $0x18] sm:$0xff]   ;;  %v1349_v23 = vld [vmem:[%s1809_s1 + $0x48] sm:$0xff]   ;;  %v1352_v26 = vld [vmem:[%s1809_s1 + $0x40] sm:$0xff]   ;;  %s1695_s19 = scalar_lea.vmem [#allocation2], %s1080_s18  ;;  %s1698_s20 = scalar_lea.vmem [#allocation4], %s1080_s18 }
  0x1f   : > { %1209 = vmatprep.subr.bf16.mxu0 %v1337_v11  ;;  %1253 = vmatprep.subr.bf16.mxu1 %v1338_v12  ;;  %v1350_v24 = vld [vmem:[%s1809_s1 + $0x88] sm:$0xff]   ;;  %v1353_v27 = vld [vmem:[%s1809_s1 + $0x80] sm:$0xff]   ;;  %v1355_v38 = vld [vmem:[%s1810_s2 + $0x18] sm:$0xff]  }
  0x20   : > { %333 = vperm.xlu0 %1329, %v322_v9   ;;  %339 = vperm.xlu1 %1330, %v324_v10   ;;  %v1351_v25 = vld [vmem:[%s1809_s1 + $0x8] sm:$0xff]   ;;  %v1354_v28 = vld [vmem:[%s1809_s1] sm:$0xff]   ;;  %v1356_v39 = vld [vmem:[%s1810_s2 + $0x10] sm:$0xff]  }
  0x21   : > { %v1357_v40 = vld [vmem:[%s1810_s2 + $0x8] sm:$0xff]   ;;  %v1358_v41 = vld [vmem:[%s1810_s2] sm:$0xff]   ;;  %v1359_v42 = vld [vmem:[%s1812_s4 + $0x30] ss:$8 sps:$4 sm:$0xff]  }
  0x22   : > { %1210 = vmatpush3.bf16.msra.mxu0 %v1339_v13  ;;  %1254 = vmatpush3.bf16.msra.mxu1 %v1338_v12  ;;  %v1361_v43 = vld [vmem:[%s1812_s4 + $0x34] ss:$8 sps:$4 sm:$0xff]   ;;  %v1364_v3 = vld [vmem:[%s1812_s4 + $0x24] ss:$8 sps:$4 sm:$0xff]   ;;  %v1362_v4 = vld [vmem:[%s1812_s4 + $0x20] ss:$8 sps:$4 sm:$0xff]  }
  0x23   : > { %1211 = vmatprep.subr.bf16.mxu0 %v1340_v14  ;;  %1255 = vmatprep.subr.bf16.mxu1 %v1341_v15  ;;  %v1367_v5 = vld [vmem:[%s1812_s4 + $0x14] ss:$8 sps:$4 sm:$0xff]   ;;  %v1365_v6 = vld [vmem:[%s1812_s4 + $0x10] ss:$8 sps:$4 sm:$0xff]   ;;  %v1370_v7 = vld [vmem:[%s1812_s4 + $0x4] ss:$8 sps:$4 sm:$0xff]  }
  0x24   : > { %v1368_v8 = vld [vmem:[%s1812_s4] ss:$8 sps:$4 sm:$0xff]  }
  0x25   : > { %v1132_v11 = vld [vmem:[%s1811_s3] ss:$0 sm:$0xff] }
  0x26   : > { %1212 = vmatpush3.bf16.msra.mxu0 %v1342_v16  ;;  %1256 = vmatpush3.bf16.msra.mxu1 %v1341_v15 }
  0x27   : > { %1213 = vmatprep.subr.bf16.mxu0 %v1343_v17  ;;  %1257 = vmatprep.subr.bf16.mxu1 %v1344_v18 }
  0x2a   : > { %1214 = vmatpush3.bf16.msra.mxu0 %v1345_v19  ;;  %1258 = vmatpush3.bf16.msra.mxu1 %v1344_v18 }
  0x2b   : > { %1215 = vmatprep.subr.bf16.mxu0 %v1346_v20  ;;  %1259 = vmatprep.subr.bf16.mxu1 %v1347_v21 }
  0x2e   : > { %1216 = vmatpush3.bf16.msra.mxu0 %v1348_v22  ;;  %1260 = vmatpush3.bf16.msra.mxu1 %v1347_v21 }
  0x2f   : > { %1217 = vmatprep.subr.bf16.mxu0 %v1349_v23  ;;  %1261 = vmatprep.subr.bf16.mxu1 %v1350_v24 }
  0x32   : > { %1218 = vmatpush3.bf16.msra.mxu0 %v1351_v25  ;;  %1262 = vmatpush3.bf16.msra.mxu1 %v1350_v24  ;;  %v787_v24 = vshrl.u32 %v325_v29, 7 }
  0x33   : > { %1219 = vmatprep.subr.bf16.mxu0 %v1352_v26  ;;  %1263 = vmatprep.subr.bf16.mxu1 %v1353_v27  ;;  %v784_v26 = vld [vmem:[%s1813_s5] sm:$0x3] }
  0x34   : > { %v788_v25 = vsub.s32 0, %v787_v24 }
  0x36   : > { %1220 = vmatpush3.bf16.msra.mxu0 %v1354_v28  ;;  %1264 = vmatpush3.bf16.msra.mxu1 %v1353_v27  ;;  %v792_v27 = vsub.s32 1, %v787_v24 }
  0x37   : > { %1269 = vmatprep.subr.bf16.mxu0 %v1355_v38  ;;  %850 = vmatprep.subr.bf16.mxu1 %v1361_v43 }
  0x97   : > { %v331_v31 = vpop.permute.xlu0 %330  ;;  %v337_v32 = vpop.permute.xlu1 %336 }
  0x98   : > { %vm348_vm0 = vcmp.eq.s32.totalorder %v337_v32, %v327_v33  ;;  %vm341_vm3 = vcmp.eq.s32.totalorder %v331_v31, %v326_v30  ;;  %vm349_vm4 = vcmp.eq.s32.totalorder %v337_v32, %v328_v34  ;;  %vm342_vm11 = vcmp.eq.s32.totalorder %v331_v31, %v327_v33 }
  0x99   : > { %vm343_vm13 = vcmp.eq.s32.totalorder %v331_v31, %v328_v34  ;;  %vm347_vm15 = vcmp.eq.s32.totalorder %v337_v32, %v326_v30 }
  0x9b   : > { %v334_v35 = vpop.permute.xlu0 %333  ;;  %v340_v36 = vpop.permute.xlu1 %339 }
  0x9c   : > { %vm344_vm1 = vcmp.eq.s32.totalorder %v334_v35, %v326_v30  ;;  %vm351_vm2 = vcmp.eq.s32.totalorder %v340_v36, %v327_v33  ;;  %vm352_vm5 = vcmp.eq.s32.totalorder %v340_v36, %v328_v34  ;;  %vm345_vm7 = vcmp.eq.s32.totalorder %v334_v35, %v327_v33 }
  0x9d   : > { %vm1122_vm6 = vmpackc.low %vm344_vm1, %vm341_vm3  ;;  %vm346_vm9 = vcmp.eq.s32.totalorder %v334_v35, %v328_v34  ;;  %vm350_vm1 = vcmp.eq.s32.totalorder %v340_v36, %v326_v30  ;;  %v789_v30 = vrot.slane %v784_v26, %v788_v25 }
  0x9e   : > { %vm1124_vm8 = vmpackc.low %vm351_vm2, %vm348_vm0  ;;  %vm714_vm0 = vcmask 523264  }
  0x9f   : > { %vm1130_vm10 = vmpackc.low %vm352_vm5, %vm349_vm4 }
  0xa0   : > { %vm1120_vm12 = vmpackc.low %vm345_vm7, %vm342_vm11 }
  0xa1   : > { %1121 = vmatprep.mubr.msk.bf16.mxu0 %vm1120_vm12, %v1464_v37  ;;  %vm1128_vm14 = vmpackc.low %vm346_vm9, %vm343_vm13 }
  0xa2   : > { %1265 = vmatprep.mubr.msk.bf16.mxu1 %vm1128_vm14, %v1464_v37  ;;  %1123 = vmatmul.mubr.msk.bf16.vlgmr.msra.gmra.mxu0 %vm1122_vm6, %v1464_v37  ;;  %vm1126_vm3 = vmpackc.low %vm350_vm1, %vm347_vm15 }
  0xa3   : > { %1266 = vmatmul.mubr.msk.bf16.vlgmr.msra.gmra.mxu1 %vm1130_vm10, %v1464_v37  ;;  %1125 = vmatprep.mubr.msk.bf16.mxu0 %vm1124_vm8, %v1464_v37 }
  0xa4   : > { %874 = vmatprep.mubr.bf16.mxu1 %v1463_v0  ;;  %1270 = vmatpush3.bf16.msra.mxu0 %v1355_v38 }
  0xa5   : > { %1271 = vmatprep.subr.bf16.mxu0 %v1356_v39  ;;  %851 = vmatpush1.bf16.msra.mxu1 %v1359_v42 }
  0xa6   : > { %852 = vmatprep.subr.bf16.mxu1 %v1364_v3 }
  0xa8   : > { %1272 = vmatpush3.bf16.msra.mxu0 %v1356_v39 }
  0xa9   : > { %1273 = vmatprep.subr.bf16.mxu0 %v1357_v40  ;;  %853 = vmatpush1.bf16.msra.mxu1 %v1362_v4 }
  0xaa   : > { %1127 = vmatmul.mubr.msk.bf16.gmra.mxu0 %vm1126_vm3, %v1464_v37  ;;  %854 = vmatprep.subr.bf16.mxu1 %v1367_v5 }
  0xac   : > { %1274 = vmatpush3.bf16.msra.mxu0 %v1357_v40 }
  0xad   : > { %1275 = vmatprep.subr.bf16.mxu0 %v1358_v41  ;;  %855 = vmatpush1.bf16.msra.mxu1 %v1365_v6 }
  0xae   : > { %856 = vmatprep.subr.bf16.mxu1 %v1370_v7 }
  0xb0   : > { %1276 = vmatpush3.bf16.msra.mxu0 %v1358_v41 }
  0xb1   : > { %857 = vmatpush1.bf16.msra.mxu1 %v1368_v8 }
 0x162   : > { %v1221_v44 = vpop.f32.mrf.mxu0 }
 0x163   : > { %v1267_v45 = vpop.f32.mrf.mxu1 }
 0x164   : > { %v1222_v46 = vpop.f32.mrf.mxu0 }
 0x165   : > { %v658_v47 = vpop.f32.mrf.mxu1  ;;  %v1223_v49 = vadd.f32 %v1222_v46, %v1221_v44 }
 0x166   : > { %v1224_v48 = vpop.f32.mrf.mxu0 }
 0x167   : > { %v1268_v50 = vpop.f32.mrf.mxu1  ;;  %v659_v55 = vadd.f32 %v1223_v49, %v658_v47 }
 0x168   : > { %v1225_v51 = vpop.f32.mrf.mxu0 }
 0x169   : > { %v1226_v52 = vadd.f32 %v1225_v51, %v1224_v48  ;;  %v661_v53 = vpop.f32.mrf.mxu1 }
 0x16a   : > { %v1227_v54 = vpop.f32.mrf.mxu0 }
 0x16b   : > { %v662_v56 = vadd.f32 %v1226_v52, %v661_v53 }
 0x16c   : > { %v1228_v57 = vpop.f32.mrf.mxu0 }
 0x16d   : > { %v673_v58 = vpack.c.bf16 %v662_v56, %v659_v55  ;;  %v1229_v60 = vadd.f32 %v1228_v57, %v1227_v54 }
 0x16e   : > { %v1230_v59 = vpop.f32.mrf.mxu0 }
 0x16f   : > { %1277 = vmatprep.mubr.msk.bf16.mxu0 %vm714_vm0, %v673_v58  ;;  %v667_v63 = vadd.f32 %v1267_v45, %v1229_v60 }
 0x170   : > { %v1231_v61 = vpop.f32.mrf.mxu0 }
 0x171   : > { %v1232_v62 = vadd.f32 %v1231_v61, %v1230_v59 }
 0x173   : > { %v670_v1 = vadd.f32 %v1268_v50, %v1232_v62 }
 0x175   : > { %v674_v2 = vpack.c.bf16 %v670_v1, %v667_v63 }
 0x177   : > { %1278 = vmatmul.mubr.msk.bf16.vlgmr.msra.gmra.mxu0 %vm714_vm0, %v674_v2 }
 0x237   : > { %v1279_v9 = vpop.f32.mrf.mxu0 }
 0x238   : > { %v764_v20 = vadd.f32 %v1279_v9, %v1132_v11 }
 0x239   : > { %v755_v10 = vpop.f32.mrf.mxu0 }
 0x23a   : > { %v756_v13 = vadd.f32 %v1132_v11, %v755_v10  ;;  %v772_v22 = vmax.f32 %v764_v20, 0.0 }
 0x23b   : > { %v1280_v12 = vpop.f32.mrf.mxu0 }
 0x23c   : > { %v770_v16 = vmax.f32 %v756_v13, 0.0  ;;  %v767_v18 = vadd.f32 %v1280_v12, %v1132_v11 }
 0x23d   : > { %v758_v14 = vpop.f32.mrf.mxu0 }
 0x23e   : > { %v759_v15 = vadd.f32 %v1132_v11, %v758_v14  ;;  %v773_v21 = vmax.f32 %v767_v18, 0.0 }
 0x240   : > { %v771_v17 = vmax.f32 %v759_v15, 0.0  ;;  %v775_v23 = vpack.c.bf16 %v773_v21, %v772_v22 }
 0x242   : > { %v774_v19 = vpack.c.bf16 %v771_v17, %v770_v16 }
 0x244   : > { %1147 = vmatmul.mubr.msk.bf16.vlgmr.msra.gmra.mxu1 %vm714_vm0, %v774_v19 }
 0x245   : > { %884 = vmatprep.mubr.bf16.mxu1 %v1463_v0  ;;  %v793_v0 = vrot.slane %v784_v26, %v792_v27 }
 0x24c   : > { %1148 = vmatmul.mubr.msk.bf16.gmra.mxu1 %vm714_vm0, %v775_v23 }
 0x304   : > { %v876_v28 = vpop.f32.mrf.mxu1 }
 0x305   : > { %v877_v33 = vadd.f32 %v876_v28, %v789_v30 }
 0x306   : > { %v878_v31 = vpop.f32.mrf.mxu1 }
 0x307   : > { %v879_v36 = vadd.f32 %v878_v31, %v793_v0 }
 0x308   : > { %v880_v32 = vpop.f32.mrf.mxu1 }
 0x309   : > { %v881_v34 = vadd.f32 %v880_v32, %v789_v30 }
 0x30a   : > { %v882_v35 = vpop.f32.mrf.mxu1 }
 0x30b   : > { %v1186_v37 = vpack.c.bf16 %v881_v34, %v877_v33  ;;  %v883_v38 = vadd.f32 %v882_v35, %v793_v0 }
 0x30c   : > { %v886_v39 = vpop.f32.mrf.mxu1 }
 0x30d   : > { %1187 = vst [vmem:[%s1695_s19] sm:$0xff] %v1186_v37   ;;  %v1196_v29 = vpack.c.bf16 %v883_v38, %v879_v36  ;;  %v887_v42 = vadd.f32 %v886_v39, %v789_v30 }
 0x30e   : > { %v888_v40 = vpop.f32.mrf.mxu1 }
 0x30f   : > { %1197 = vst [vmem:[%s1698_s20] sm:$0xff] %v1196_v29   ;;  %v889_v45 = vadd.f32 %v888_v40, %v793_v0 }
 0x310   : > { %v890_v41 = vpop.f32.mrf.mxu1 }
 0x311   : > { %v891_v43 = vadd.f32 %v890_v41, %v789_v30 }
 0x312   : > { %v892_v44 = vpop.f32.mrf.mxu1 }
 0x313   : > { %v1191_v46 = vpack.c.bf16 %v891_v43, %v887_v42  ;;  %v893_v47 = vadd.f32 %v892_v44, %v793_v0  ;;  %947 = sbr.rel (!%p1549_p5) target bundleno = 820 (0x334), region = 48 }
 0x315   : > { %1203 = vst [vmem:[%s1695_s19 + $0x8] sm:$0xff] %v1191_v46   ;;  %v1201_v48 = vpack.c.bf16 %v893_v47, %v889_v45 }
 0x317   : > { %1204 = vst [vmem:[%s1698_s20 + $0x8] sm:$0xff] %v1201_v48  }
 0x318   : > { %s1829_s23 = smov (!%p950_p11, %s949_s23), 4 }
 0x319   : > { %s1708_s29 = sshll.u32 %s1829_s23, 6 }
 0x31a   : > { %s954_s8 = ssub.s32 256, %s1708_s29 }
 0x31b   : > { %955 = vsyncadd %s1816_s21, %s954_s8  ;;  %p1161_p12 = scmp.ne.s32.totalorder %s1708_s29, 0  ;;  %s1181_s9 = sshll.u32 %s1532_s28, 8 }
 0x31c   : > { %s1718_s17 = scalar_lea.hbm %s1814_s6, %s1181_s9  ;;  %s960_s18 = sshll.u32 %s1695_s19, 4  ;;  %s1721_s18 = int_to_ptr.vmem [resolvable:$true] %s960_s18 }
 0x31d   : > { %s1371_s23 = scalar_lea.vmem %s1721_s18, %s1708_s29  ;;  %s1465_s8 = smov [#allocation2]  }
 0x31e   : > { %p1372_p13 = scmp.ne.s32.totalorder %s1721_s18, %s1371_s23  ;;  %s1375_s22 = sshll.u32 %s1465_s8, 4  ;;  %s1376_s22 = int_to_ptr.vmem [resolvable:$false] %s1375_s22 }
 0x31f   : > { %s1377_s21 = scalar_lea.vmem %s1376_s22, 512  ;;  %p1378_p2 = scmp.lt.s32.totalorder %s1721_s18, %s1376_s22 }
 0x320   : > { %p1373_p0 = pnand %p1372_p13, %p1161_p12  ;;  %p1379_p3 = scmp.lt.s32.totalorder %s1377_s21, %s1371_s23 }
 0x322   : > { %p1374_p1 = pneg %p1373_p0  ;;  %p1380_p4 = por %p1379_p3, %p1378_p2 }
 0x324   : > { %p1381_p7 = pnand %p1380_p4, %p1374_p1 }
 0x326   : > { %1384 = shalt.err (!%p1381_p7)
}
 0x327   : > { %s1385_s19 = scalar_lea.hbm %s1718_s17, %s1708_s29  ;;  %s1389_s16 = scalar_lea.hbm %s1814_s6, 320 }
 0x328   : > { %p1386_p8 = scmp.ne.s32.totalorder %s1718_s17, %s1385_s19  ;;  %p1390_p11 = scmp.lt.s32.totalorder %s1718_s17, %s1814_s6 }
 0x329   : > { %p1391_p13 = scmp.lt.s32.totalorder %s1389_s16, %s1385_s19 }
 0x32a   : > { %p1387_p9 = pnand %p1386_p8, %p1161_p12 }
 0x32b   : > { %p1392_p0 = por %p1391_p13, %p1390_p11 }
 0x32c   : > { %p1388_p10 = pneg %p1387_p9 }
 0x32e   : > { %p1393_p1 = pnand %p1392_p0, %p1388_p10 }
 0x330   : > { %1396 = shalt.err (!%p1393_p1)
}
 0x331   : > { %s1466_s21 = smov 64   ;;  %s1467_s23 = smov 4  }
 0x332   : > { %s1821_s0 = scalar_lea.sflag [#allocation3], %s1688_s15 }
 0x333   : > { %966 = dma.vmem_to_hbm [thread:$0]  (%p1161_p12), %s1721_s18, %s1708_s29, %s1718_s17, %s1821_s0, %s1466_s21, %s1466_s21, %s1467_s23  }
 0x334 PF: > { %969 = sbr.rel (!%p1549_p5) target bundleno = 853 (0x355), region = 52  ;;  %s971_s19 = ssub.s32 (%p1549_p5), 5, %s1560_s13 }
 0x335   : > { %p972_p2 = scmp.lt.s32.totalorder (%p1549_p5), %s971_s19, 4  ;;  %s1822_s16 = scalar_lea.sflag (%p1549_p5), [#allocation5], %s1688_s15 }
 0x339   : > { %s1831_s19 = smov (!%p972_p2, %s971_s19), 4 }
 0x33a   : > { %s1751_s9 = sshll.u32 %s1831_s19, 6 }
 0x33b   : > { %s976_s14 = ssub.s32 256, %s1751_s9 }
 0x33c   : > { %977 = vsyncadd %s1822_s16, %s976_s14  ;;  %p1167_p12 = scmp.ne.s32.totalorder %s1751_s9, 0  ;;  %s1182_s0 = sshll.u32 %s1532_s28, 8 }
 0x33d   : > { %s1761_s17 = scalar_lea.hbm %s1815_s7, %s1182_s0  ;;  %s982_s13 = sshll.u32 %s1698_s20, 4  ;;  %s1764_s13 = int_to_ptr.vmem [resolvable:$true] %s982_s13 }
 0x33e   : > { %s1397_s18 = scalar_lea.vmem %s1764_s13, %s1751_s9  ;;  %s1468_s8 = smov [#allocation4]  }
 0x33f   : > { %p1398_p5 = scmp.ne.s32.totalorder %s1764_s13, %s1397_s18  ;;  %s1401_s22 = sshll.u32 %s1468_s8, 4  ;;  %s1402_s22 = int_to_ptr.vmem [resolvable:$false] %s1401_s22 }
 0x340   : > { %s1403_s28 = scalar_lea.vmem %s1402_s22, 512  ;;  %p1404_p7 = scmp.lt.s32.totalorder %s1764_s13, %s1402_s22 }
 0x341   : > { %p1399_p3 = pnand %p1398_p5, %p1167_p12  ;;  %p1405_p8 = scmp.lt.s32.totalorder %s1403_s28, %s1397_s18 }
 0x343   : > { %p1400_p4 = pneg %p1399_p3  ;;  %p1406_p9 = por %p1405_p8, %p1404_p7 }
 0x345   : > { %p1407_p10 = pnand %p1406_p9, %p1400_p4 }
 0x347   : > { %1410 = shalt.err (!%p1407_p10)
}
 0x348   : > { %s1411_s20 = scalar_lea.hbm %s1761_s17, %s1751_s9  ;;  %s1415_s19 = scalar_lea.hbm %s1815_s7, 320 }
 0x349   : > { %p1412_p11 = scmp.ne.s32.totalorder %s1761_s17, %s1411_s20  ;;  %p1416_p1 = scmp.lt.s32.totalorder %s1761_s17, %s1815_s7 }
 0x34a   : > { %p1417_p2 = scmp.lt.s32.totalorder %s1415_s19, %s1411_s20 }
 0x34b   : > { %p1413_p13 = pnand %p1412_p11, %p1167_p12 }
 0x34c   : > { %p1418_p5 = por %p1417_p2, %p1416_p1 }
 0x34d   : > { %p1414_p0 = pneg %p1413_p13 }
 0x34f   : > { %p1419_p3 = pnand %p1418_p5, %p1414_p0 }
 0x351   : > { %1422 = shalt.err (!%p1419_p3)
}
 0x352   : > { %s1469_s0 = smov 64   ;;  %s1470_s11 = smov 4  }
 0x353   : > { %s1823_s29 = scalar_lea.sflag [#allocation5], %s1688_s15 }
 0x354   : > { %988 = dma.vmem_to_hbm [thread:$0]  (%p1167_p12), %s1764_s13, %s1751_s9, %s1761_s17, %s1823_s29, %s1469_s0, %s1469_s0, %s1470_s11  }
 0x355 PF: > { %p1290_p4 = scmp.ge.s32.totalorder %s1461_s27, 2  ;;  %s997_s18 = sand.u32 1, %s1449_s24  }
 0x356   : > { %s998_s8 = scalar_lea.sflag [#allocation3], %s997_s18 }
 0x357   : > { %p1284_p7 = pnand %p1290_p4, %p1553_p6 }
 0x359   : > { %p1285_p8 = pneg %p1284_p7 }
 0x35b   : > { %1440 = dma.done.wait (%p1285_p8), %s998_s8, 256  }
 0x35c   : > { %1442 = vsyncadd (%p1285_p8), %s998_s8, 4294967040  ;;  %s1007_s22 = scalar_lea.sflag [#allocation5], %s997_s18 }
 0x35d   : > { %1444 = dma.done.wait (%p1285_p8), %s1007_s22, 256  }
 0x35e   : > { %1446 = vsyncadd (%p1285_p8), %s1007_s22, 4294967040  ;;  %p21_p12 = scmp.ge.s32.totalorder %s1536_s30, 4   ;;  %s1824_s24 = smov %s1453_s25 }
 0x35f   : > { %s1825_s25 = smov %s1457_s26  ;;  %s1826_s26 = smov %s1547_s10 }
 0x360   : > { %s1827_s27 = smov %s1536_s30  ;;  %23 = sbr.rel (!%p21_p12) target bundleno = 7 (0x7), region = 96 }
 0x365   :  { %1012 = vsyncpa [#allocation3], 1 }
 0x366   :  { %1014 = vsyncpa [#allocation3 + $0x1], 1 }
 0x367   :  { %1015 = vsyncpa [#allocation5], 1 }
 0x368   :  { %1017 = vsyncpa [#allocation5 + $0x1], 1 }

</bundles_post_ra>
